<compile_context>
chip_gen: v6e
topology: v6e:2x2x1
jax: 0.10.0
libtpu: 0.0.40
codegen_flags: <defaults>
</compile_context>

<pallas_src>
import functools

import jax
import jax.numpy as jnp
from jax.experimental import pallas as pl
from jax.experimental.pallas import tpu as pltpu

LANE = 128          # padded hidden / action lane width (vreg lane count)
MAX_B_TILE = 1024   # max batch rows per grid step (tunable; VMEM use is tiny)


def _round_up(x, m):
    return ((x + m - 1) // m) * m


def _pick_tile(b):
    """Batch rows per grid step.

    - Small batches (<= 256): one tile equal to the full batch (always legal).
    - Larger batches: split into at least two tiles (rounded to 8 sublanes) so
      the "parallel" grid axis can use both v7x TensorCores, capped at
      MAX_B_TILE rows to stay near the HBM-roofline sweet spot.
    """
    if b <= 256:
        return b
    return min(MAX_B_TILE, _round_up(-(-b // 2), 8))


def _actor_kernel(x_ref, w_ref, b_ref, probs_ref, *, n_actions, d_in):
    """One batch tile of the actor MLP + per-row softmax.

    x_ref     : (B_TILE, d_in)        raw states, one per row (no lane padding)
    w_ref     : (3, LANE, LANE)       stacked, pre-transposed, zero-padded weights
    b_ref     : (8, LANE)             rows 0..2 = b1, b2, b3 (zero-padded), rest 0
    probs_ref : (B_TILE, n_actions)   softmax probabilities (lane-narrow store)
    """
    x = x_ref[...]
    b = b_ref[...]

    # Layer 1: only the first d_in rows of the padded weight matter (K = d_in).
    h1 = jnp.dot(x, w_ref[0, :d_in, :], preferred_element_type=jnp.float32) + b[0:1, :]
    h1 = jnp.maximum(h1, 0.0)                                    # ReLU

    h2 = jnp.dot(h1, w_ref[1], preferred_element_type=jnp.float32) + b[1:2, :]
    h2 = jnp.maximum(h2, 0.0)                                    # ReLU

    logits = jnp.dot(h2, w_ref[2], preferred_element_type=jnp.float32) + b[2:3, :]

    # Mask padded action lanes so they receive zero probability.
    lane = jax.lax.broadcasted_iota(jnp.int32, logits.shape, 1)
    logits = jnp.where(lane < n_actions, logits, jnp.float32(-1e30))

    # Softmax over the action axis (== PyTorch Softmax(dim=0) on the 1-D output).
    m = jnp.max(logits, axis=-1, keepdims=True)
    e = jnp.exp(logits - m)
    denom = jnp.sum(e, axis=-1, keepdims=True)
    probs = e * pl.reciprocal(denom, approx=False)  # exact: rows sum to 1 (f32)
    probs_ref[...] = probs[:, :n_actions].astype(probs_ref.dtype)


def pack_params(params):
    """One-time packing of PyTorch-layout params into kernel layout.

    Transposes to (in_features, out_features), zero-pads every dim to LANE,
    stacks the three weights into one (3, LANE, LANE) array and the three
    biases into one (8, LANE) array.  Call once, reuse across calls.
    """
    h = params["w1"].shape[0]
    d = params["w1"].shape[1]
    a = params["w3"].shape[0]
    assert d <= LANE and h <= LANE and a <= LANE, "dims must fit in one 128-lane tile"

    def pad_t(w):  # (out, in) torch layout -> (LANE, LANE) in (in, out) layout
        wt = jnp.asarray(w, jnp.float32).T
        return jnp.zeros((LANE, LANE), jnp.float32).at[: wt.shape[0], : wt.shape[1]].set(wt)

    w_stack = jnp.stack([pad_t(params["w1"]), pad_t(params["w2"]), pad_t(params["w3"])])

    b_stack = jnp.zeros((8, LANE), jnp.float32)
    b_stack = b_stack.at[0, :h].set(jnp.asarray(params["b1"], jnp.float32))
    b_stack = b_stack.at[1, :h].set(jnp.asarray(params["b2"], jnp.float32))
    b_stack = b_stack.at[2, :a].set(jnp.asarray(params["b3"], jnp.float32))

    return {"w": w_stack, "b": b_stack, "input_dim": int(d), "n_actions": int(a)}


@functools.partial(jax.jit, static_argnames=("n_actions",))
def _forward_impl(states, w_stack, b_stack, n_actions):
    b, d = states.shape
    x = states.astype(jnp.float32)

    # Features must be sublane (8) aligned for the in-kernel weight slice.
    # For the module defaults (d = 32) this branch emits no op at all.
    d_pad = _round_up(max(d, 8), 8)
    if d_pad != d:
        x = jnp.pad(x, ((0, 0), (0, d_pad - d)))

    b_tile = _pick_tile(b)
    grid = pl.cdiv(b, b_tile)

    return pl.pallas_call(
        functools.partial(_actor_kernel, n_actions=n_actions, d_in=d_pad),
        out_shape=jax.ShapeDtypeStruct((b, n_actions), jnp.float32),
        grid_spec=pltpu.PrefetchScalarGridSpec(
            num_scalar_prefetch=0,
            grid=(grid,),
            in_specs=[
                pl.BlockSpec((b_tile, d_pad), lambda i: (i, 0)),      # streamed x tile
                pl.BlockSpec((3, LANE, LANE), lambda i: (0, 0, 0)),   # weights, VMEM-resident
                pl.BlockSpec((8, LANE), lambda i: (0, 0)),            # biases, VMEM-resident
            ],
            out_specs=pl.BlockSpec((b_tile, n_actions), lambda i: (i, 0)),
        ),
        compiler_params=pltpu.CompilerParams(
            dimension_semantics=("parallel",)),  # batch tiles shard over v7x's 2 TCs
    )(x, w_stack, b_stack)


def actor_forward_batched(states, packed):
    """states: (B, D) -> probs (B, A); one independent state (and softmax) per row."""
    return _forward_impl(states, packed["w"], packed["b"], packed["n_actions"])


def actor_forward(state, packed):
    """Single 1-D state forward matching the PyTorch module's semantics."""
    probs = actor_forward_batched(state.reshape(1, -1), packed)[0]
    dist_probs = probs.reshape(probs.shape[0])
    # TODO(synk): torch.distributions.Categorical has no Pallas equivalent; we
    # return its parameter vector (dist_probs) instead of a distribution object.
    return dist_probs, probs


def init_params(key, input_dim, fc1_dims, n_actions):
    """Deterministic init matching nn.Linear default (U(-1/sqrt(fan_in), +))."""
    ks = jax.random.split(key, 6)

    def linear(kw, kb, fan_in, fan_out):
        bound = 1.0 / jnp.sqrt(jnp.float32(fan_in))
        w = jax.random.uniform(kw, (fan_out, fan_in), jnp.float32, -bound, bound)
        b = jax.random.uniform(kb, (fan_out,), jnp.float32, -bound, bound)
        return w, b

    w1, b1 = linear(ks[0], ks[1], input_dim, fc1_dims)
    w2, b2 = linear(ks[2], ks[3], fc1_dims, fc1_dims)
    w3, b3 = linear(ks[4], ks[5], fc1_dims, n_actions)
    return {"w1": w1, "b1": b1, "w2": w2, "b2": b2, "w3": w3, "b3": b3}


if __name__ == "__main__":
    key = jax.random.PRNGKey(0)
    k_param, k_state, k_batch, k_big = jax.random.split(key, 4)

    input_dim = 32      # input_dims = (32,)
    fc1_dims = 45       # module default
    n_actions = 8

    params = init_params(k_param, input_dim, fc1_dims, n_actions)
    packed = pack_params(params)   # one-time packing (transposes hoisted out of calls)

    # Pure-JAX reference (mirrors the PyTorch module on a single state).
    def ref_single(s, p):
        h1 = jnp.maximum(s @ p["w1"].T + p["b1"], 0.0)
        h2 = jnp.maximum(h1 @ p["w2"].T + p["b2"], 0.0)
        logits = h2 @ p["w3"].T + p["b3"]
        return jax.nn.softmax(logits, axis=0)

    # --- single-state path (matches PyTorch forward(state)) ---
    state = jax.random.normal(k_state, (input_dim,), dtype=jnp.float32)
    dist_probs, probs = actor_forward(state, packed)
    jax.block_until_ready(probs)

    assert probs.shape == (n_actions,)
    assert bool(jnp.all(probs >= 0.0))
    assert abs(float(jnp.sum(probs)) - 1.0) < 1e-5
    assert bool(jnp.allclose(probs, ref_single(state, params), atol=1e-5, rtol=1e-5))

    # --- small batched path (single tile) ---
    B = 64
    states = jax.random.normal(k_batch, (B, input_dim), dtype=jnp.float32)
    probs_b = actor_forward_batched(states, packed)
    jax.block_until_ready(probs_b)

    ref_b = jax.vmap(lambda s: ref_single(s, params))(states)
    assert probs_b.shape == (B, n_actions)
    assert bool(jnp.allclose(jnp.sum(probs_b, axis=-1), 1.0, atol=1e-5))
    assert bool(jnp.allclose(probs_b, ref_b, atol=1e-5, rtol=1e-5))

    # --- larger batch: exercises the 2-tile grid and the ragged last tile ---
    B2 = 600
    states2 = jax.random.normal(k_big, (B2, input_dim), dtype=jnp.float32)
    probs_b2 = actor_forward_batched(states2, packed)
    jax.block_until_ready(probs_b2)

    ref_b2 = jax.vmap(lambda s: ref_single(s, params))(states2)
    assert probs_b2.shape == (B2, n_actions)
    assert bool(jnp.allclose(jnp.sum(probs_b2, axis=-1), 1.0, atol=1e-5))
    assert bool(jnp.allclose(probs_b2, ref_b2, atol=1e-5, rtol=1e-5))

    print("KERNEL_OK")
</pallas_src>

<mosaic_0001>
module attributes {stable_mosaic.version = 11 : i64} {
  func.func @_actor_kernel(%arg0: i32, %arg1: memref<1x32xf32, #tpu.memory_space<vmem>>, %arg2: memref<3x128x128xf32, #tpu.memory_space<vmem>>, %arg3: memref<8x128xf32, #tpu.memory_space<vmem>>, %arg4: memref<1x8xf32, #tpu.memory_space<vmem>>) attributes {dimension_semantics = [#tpu.dimension_semantics<parallel>], iteration_bounds = array<i64: 1>, scalar_prefetch = 0 : i64, scratch_operands = 0 : i64, tpu.core_type = #tpu.core_type<tc>, window_params = [{transform_indices = @transform_0, window_bounds = array<i64: 1, 32>}, {pipeline_mode = #tpu.pipeline_mode<synchronous>, transform_indices = @transform_1, window_bounds = array<i64: 3, 128, 128>}, {pipeline_mode = #tpu.pipeline_mode<synchronous>, transform_indices = @transform_2, window_bounds = array<i64: 8, 128>}, {transform_indices = @transform_3, window_bounds = array<i64: 1, 8>}]} {
    %c0 = arith.constant 0 : index
    %c0_0 = arith.constant 0 : index
    %0 = vector.load %arg1[%c0, %c0_0] : memref<1x32xf32, #tpu.memory_space<vmem>>, vector<1x32xf32>
    %c0_1 = arith.constant 0 : index
    %c0_2 = arith.constant 0 : index
    %1 = vector.load %arg3[%c0_1, %c0_2] : memref<8x128xf32, #tpu.memory_space<vmem>>, vector<8x128xf32>
    %c0_3 = arith.constant 0 : index
    %c0_4 = arith.constant 0 : index
    %c0_5 = arith.constant 0 : index
    %2 = vector.load %arg2[%c0_3, %c0_4, %c0_5] : memref<3x128x128xf32, #tpu.memory_space<vmem>>, vector<1x32x128xf32>
    %3 = vector.shape_cast %2 : vector<1x32x128xf32> to vector<32x128xf32>
    %cst = arith.constant dense<0.000000e+00> : vector<1x128xf32>
    %4 = tpu.matmul %0, %3, %cst {dimension_numbers = #tpu.dot_dimension_numbers<[1], [0], [0], [1], [0, 0, 1, 1], [], []>} : vector<1x32xf32>, vector<32x128xf32>, vector<1x128xf32> -> vector<1x128xf32>
    %5 = vector.extract_strided_slice %1 {offsets = [0, 0], sizes = [1, 128], strides = [1, 1]} : vector<8x128xf32> to vector<1x128xf32>
    %6 = arith.addf %4, %5 : vector<1x128xf32>
    %cst_6 = arith.constant 0.000000e+00 : f32
    %7 = vector.broadcast %cst_6 : f32 to vector<1x128xf32>
    %8 = arith.maximumf %6, %7 : vector<1x128xf32>
    %c1 = arith.constant 1 : index
    %c0_7 = arith.constant 0 : index
    %c0_8 = arith.constant 0 : index
    %9 = vector.load %arg2[%c1, %c0_7, %c0_8] : memref<3x128x128xf32, #tpu.memory_space<vmem>>, vector<1x128x128xf32>
    %10 = vector.shape_cast %9 : vector<1x128x128xf32> to vector<128x128xf32>
    %cst_9 = arith.constant dense<0.000000e+00> : vector<1x128xf32>
    %11 = tpu.matmul %8, %10, %cst_9 {dimension_numbers = #tpu.dot_dimension_numbers<[1], [0], [0], [1], [0, 0, 1, 1], [], []>} : vector<1x128xf32>, vector<128x128xf32>, vector<1x128xf32> -> vector<1x128xf32>
    %12 = vector.extract_strided_slice %1 {offsets = [1, 0], sizes = [1, 128], strides = [1, 1]} : vector<8x128xf32> to vector<1x128xf32>
    %13 = arith.addf %11, %12 : vector<1x128xf32>
    %cst_10 = arith.constant 0.000000e+00 : f32
    %14 = vector.broadcast %cst_10 : f32 to vector<1x128xf32>
    %15 = arith.maximumf %13, %14 : vector<1x128xf32>
    %c2 = arith.constant 2 : index
    %c0_11 = arith.constant 0 : index
    %c0_12 = arith.constant 0 : index
    %16 = vector.load %arg2[%c2, %c0_11, %c0_12] : memref<3x128x128xf32, #tpu.memory_space<vmem>>, vector<1x128x128xf32>
    %17 = vector.shape_cast %16 : vector<1x128x128xf32> to vector<128x128xf32>
    %cst_13 = arith.constant dense<0.000000e+00> : vector<1x128xf32>
    %18 = tpu.matmul %15, %17, %cst_13 {dimension_numbers = #tpu.dot_dimension_numbers<[1], [0], [0], [1], [0, 0, 1, 1], [], []>} : vector<1x128xf32>, vector<128x128xf32>, vector<1x128xf32> -> vector<1x128xf32>
    %19 = vector.extract_strided_slice %1 {offsets = [2, 0], sizes = [1, 128], strides = [1, 1]} : vector<8x128xf32> to vector<1x128xf32>
    %20 = arith.addf %18, %19 : vector<1x128xf32>
    %21 = tpu.iota {dimensions = array<i32: 1>} : vector<1x128xi32>
    %c8_i32 = arith.constant 8 : i32
    %22 = vector.broadcast %c8_i32 : i32 to vector<1x128xi32>
    %23 = arith.cmpi slt, %21, %22 : vector<1x128xi32>
    %cst_14 = arith.constant -1.000000e+30 : f32
    %24 = vector.broadcast %cst_14 : f32 to vector<1x128xf32>
    %25 = arith.select %23, %20, %24 : vector<1x128xi1>, vector<1x128xf32>
    %cst_15 = arith.constant dense<0xFF800000> : vector<1xf32>
    %26 = vector.multi_reduction <maximumf>, %25, %cst_15 [1] : vector<1x128xf32> to vector<1xf32>
    %27 = vector.shape_cast %26 : vector<1xf32> to vector<1x1xf32>
    %28 = vector.broadcast %27 : vector<1x1xf32> to vector<1x128xf32>
    %29 = arith.subf %25, %28 : vector<1x128xf32>
    %30 = math.exp %29 : vector<1x128xf32>
    %cst_16 = arith.constant dense<0.000000e+00> : vector<1xf32>
    %31 = vector.multi_reduction <add>, %30, %cst_16 [1] : vector<1x128xf32> to vector<1xf32>
    %32 = vector.shape_cast %31 : vector<1xf32> to vector<1x1xf32>
    %33 = tpu.reciprocal %32 : vector<1x1xf32> -> vector<1x1xf32>
    %34 = vector.broadcast %33 : vector<1x1xf32> to vector<1x128xf32>
    %35 = arith.mulf %30, %34 : vector<1x128xf32>
    %36 = vector.extract_strided_slice %35 {offsets = [0, 0], sizes = [1, 8], strides = [1, 1]} : vector<1x128xf32> to vector<1x8xf32>
    %c0_17 = arith.constant 0 : index
    %c0_18 = arith.constant 0 : index
    %37 = vector.load %arg4[%c0_17, %c0_18] : memref<1x8xf32, #tpu.memory_space<vmem>>, vector<1x8xf32>
    tpu.vector_store %arg4[%c0_17, %c0_18], %36 {strides = array<i32>} : memref<1x8xf32, #tpu.memory_space<vmem>>, vector<1x8xf32>,
    return
  }
  func.func @transform_0(%arg0: i32) -> (i32, i32) {
    %c0_i32 = arith.constant 0 : i32
    %c0_i32_0 = arith.constant 0 : i32
    return %arg0, %c0_i32 : i32, i32
  }
  func.func @transform_1(%arg0: i32) -> (i32, i32, i32) {
    %c0_i32 = arith.constant 0 : i32
    %c0_i32_0 = arith.constant 0 : i32
    %c0_i32_1 = arith.constant 0 : i32
    %c0_i32_2 = arith.constant 0 : i32
    return %c0_i32, %c0_i32_0, %c0_i32_1 : i32, i32, i32
  }
  func.func @transform_2(%arg0: i32) -> (i32, i32) {
    %c0_i32 = arith.constant 0 : i32
    %c0_i32_0 = arith.constant 0 : i32
    %c0_i32_1 = arith.constant 0 : i32
    return %c0_i32, %c0_i32_0 : i32, i32
  }
  func.func @transform_3(%arg0: i32) -> (i32, i32) {
    %c0_i32 = arith.constant 0 : i32
    %c0_i32_0 = arith.constant 0 : i32
    return %arg0, %c0_i32 : i32, i32
  }
}

</mosaic_0001>

<bundles_post_ra>
// kernel: _forward_impl.1
= control target key start
LH: loop header
LB: loop body
LE: loop exit
PB: predicated region body
PF: predicated region fallthrough
CT: control target
= control target key end

     0   :  { %8 = vsyncpa [#allocation3], 0  ;;  %s648_s0 = inlined_call_operand.hbm [shape: f32[1,32], index: 0, kind: input, shape index: {}]   ;;  %s649_s1 = inlined_call_operand.hbm [shape: f32[3,128,128], index: 1, kind: input, shape index: {}]   ;;  %s650_s2 = inlined_call_operand.hbm [shape: f32[8,128], index: 2, kind: input, shape index: {}]   ;;  %s651_s3 = inlined_call_operand.hbm [shape: f32[1,8], index: 3, kind: output, shape index: {}]  }
   0x1   :  { %9 = vsyncpa [#allocation6], 0 }
   0x2   :  { %10 = vsyncpa [#allocation4], 0  ;;  %s566_s12 = smov [#allocation5]  }
   0x3   :  { %s26_s13 = sshll.u32 %s566_s12, 4  ;;  %s27_s13 = int_to_ptr.vmem [resolvable:$true] %s26_s13 }
   0x4   :  { %s488_s14 = scalar_lea.vmem %s27_s13, 6144  ;;  %p493_p1 = scmp.lt.s32.totalorder %s27_s13, %s27_s13 }
   0x5   :  { %p489_p0 = scmp.ne.s32.totalorder %s27_s13, %s488_s14  ;;  %p494_p2 = scmp.lt.s32.totalorder %s488_s14, %s488_s14 }
   0x7   :  { %p495_p3 = por %p494_p2, %p493_p1 }
   0x9   :  { %p496_p4 = pnand %p495_p3, %p489_p0 }
   0xb   :  { %499 = shalt.err (!%p496_p4)
}
   0xc   :  { %s567_s15 = smov 128   ;;  %s568_s16 = smov 8  }
   0xd   :  { %32 = dma.hbm_to_vmem [thread:$0]  %s649_s1, 6144, %s27_s13, [#allocation6], %s567_s15, %s567_s15, %s568_s16  }
   0xe   :  { %s569_s19 = smov [#allocation2]   ;;  %s570_s21 = smov [#allocation7]  }
   0xf   :  { %s17_s20 = sshll.u32 %s569_s19, 4  ;;  %s39_s22 = sshll.u32 %s570_s21, 4  ;;  %s18_s20 = int_to_ptr.vmem [resolvable:$true] %s17_s20  ;;  %s40_s22 = int_to_ptr.vmem [resolvable:$true] %s39_s22 }
  0x10   :  { %s508_s23 = scalar_lea.vmem %s18_s20, 16  ;;  %s512_s24 = scalar_lea.vmem %s18_s20, 32 }
  0x11   :  { %p509_p5 = scmp.ne.s32.totalorder %s18_s20, %s508_s23  ;;  %p513_p6 = scmp.lt.s32.totalorder %s18_s20, %s18_s20 }
  0x12   :  { %p514_p7 = scmp.lt.s32.totalorder %s512_s24, %s508_s23 }
  0x14   :  { %p515_p8 = por %p514_p7, %p513_p6 }
  0x16   :  { %p516_p9 = pnand %p515_p8, %p509_p5 }
  0x18   :  { %519 = shalt.err (!%p516_p9)
}
  0x19   :  { %20 = dma.hbm_to_vmem [thread:$0]  %s648_s0, 16, %s18_s20, [#allocation3]  }
  0x1a   :  { %s528_s27 = scalar_lea.vmem %s40_s22, 128  ;;  %p533_p11 = scmp.lt.s32.totalorder %s40_s22, %s40_s22 }
  0x1b   :  { %p529_p10 = scmp.ne.s32.totalorder %s40_s22, %s528_s27  ;;  %p534_p12 = scmp.lt.s32.totalorder %s528_s27, %s528_s27 }
  0x1d   :  { %p535_p13 = por %p534_p12, %p533_p11 }
  0x1f   :  { %p536_p0 = pnand %p535_p13, %p529_p10 }
  0x21   :  { %539 = shalt.err (!%p536_p0)
}
  0x22   :  { %42 = dma.hbm_to_vmem [thread:$0]  %s650_s2, 128, %s40_s22, [#allocation6]  }
  0x23   :  { %560 = dma.done.wait [#allocation3], 16  }
  0x24   :  { %561 = vsyncadd [#allocation3], 4294967280 }
  0x25   :  { %562 = dma.done.wait [#allocation6], 6272  }
  0x26   :  { %563 = vsyncadd [#allocation6], 4294961024  ;;  %v571_v0 = vmov 0.0   ;;  %vm572_vm0 = vmmov 0   ;;  %v57_v1 = vld [vmem:[#allocation5 + $0x18] sm:$0xff]  ;;  %v56_v2 = vld [vmem:[#allocation5 + $0x10] sm:$0xff]  ;;  %v313_v48 = vlaneseq }
  0x27   :  { %387 = vmatprep.subr.mxu0 %v571_v0  ;;  %395 = vmatprep.mubr.msk.f32.mxu0 %vm572_vm0, %v571_v0  ;;  %v149_v3 = vld [vmem:[#allocation5 + $0xf8] sm:$0xff]  ;;  %v55_v4 = vld [vmem:[#allocation5 + $0x8] sm:$0xff]  ;;  %v148_v5 = vld [vmem:[#allocation5 + $0xf0] sm:$0xff]  ;;  %vm58_vm1 = vcmask 261120   ;;  %vm317_vm3 = vcmask 1040384   ;;  %s573_s0 = smov [#allocation8]  }
  0x28   :  { %398 = vmatprep.subr.mxu1 %v571_v0  ;;  %430 = vmatprep.mubr.msk.f32.mxu1 %vm572_vm0, %v571_v0  ;;  %v147_v6 = vld [vmem:[#allocation5 + $0xe8] sm:$0xff]  ;;  %v54_v7 = vld [vmem:[#allocation5] sm:$0xff]  ;;  %v52_v8 = vld [vmem:[#allocation2] sm:$0x1]  ;;  %v314_v49 = vand.u32 127, %v313_v48  ;;  %s337_s2 = sshll.u32 %s573_s0, 4  ;;  %s338_s2 = int_to_ptr.vmem [resolvable:$true] %s337_s2 }
  0x29   :  { %388 = vmatpush3.msra.mxu0 %v57_v1  ;;  %399 = vmatpush3.msra.mxu1 %v149_v3  ;;  %v146_v9 = vld [vmem:[#allocation5 + $0xe0] sm:$0xff]  ;;  %v145_v10 = vld [vmem:[#allocation5 + $0xd8] sm:$0xff]  ;;  %v144_v11 = vld [vmem:[#allocation5 + $0xd0] sm:$0xff]  ;;  %vm329_vm4 = vcmask 57344   ;;  %s540_s29 = scalar_lea.vmem %s338_s2, 16  ;;  %s544_s30 = scalar_lea.vmem %s338_s2, 32 }
  0x2a   :  { %389 = vmatprep.subr.mxu0 %v571_v0  ;;  %400 = vmatprep.subr.mxu1 %v571_v0  ;;  %v143_v12 = vld [vmem:[#allocation5 + $0xc8] sm:$0xff]  ;;  %v142_v13 = vld [vmem:[#allocation5 + $0xc0] sm:$0xff]  ;;  %v141_v14 = vld [vmem:[#allocation5 + $0xb8] sm:$0xff]  ;;  %vm315_vm2 = vcmp.lt.s32.totalorder %v314_v49, 8  ;;  %p541_p1 = scmp.ne.s32.totalorder %s338_s2, %s540_s29  ;;  %p545_p2 = scmp.lt.s32.totalorder %s338_s2, %s338_s2 }
  0x2b   :  { %390 = vmatpush3.msra.mxu0 %v56_v2  ;;  %401 = vmatpush3.msra.mxu1 %v148_v5  ;;  %v140_v15 = vld [vmem:[#allocation5 + $0xb0] sm:$0xff]  ;;  %v139_v16 = vld [vmem:[#allocation5 + $0xa8] sm:$0xff]  ;;  %v138_v17 = vld [vmem:[#allocation5 + $0xa0] sm:$0xff]  ;;  %p546_p3 = scmp.lt.s32.totalorder %s544_s30, %s540_s29 }
  0x2c   :  { %391 = vmatprep.subr.mxu0 %v571_v0  ;;  %402 = vmatprep.subr.mxu1 %v571_v0  ;;  %v137_v18 = vld [vmem:[#allocation5 + $0x98] sm:$0xff]  ;;  %v136_v19 = vld [vmem:[#allocation5 + $0x90] sm:$0xff]  ;;  %v135_v20 = vld [vmem:[#allocation5 + $0x88] sm:$0xff] }
  0x2d   :  { %392 = vmatpush3.msra.mxu0 %v55_v4  ;;  %403 = vmatpush3.msra.mxu1 %v147_v6  ;;  %v134_v21 = vld [vmem:[#allocation5 + $0x80] sm:$0xff]  ;;  %v240_v22 = vld [vmem:[#allocation5 + $0x178] sm:$0xff]  ;;  %v239_v23 = vld [vmem:[#allocation5 + $0x170] sm:$0xff]  ;;  %p547_p4 = por %p546_p3, %p545_p2 }
  0x2e   :  { %393 = vmatprep.subr.mxu0 %v571_v0  ;;  %404 = vmatprep.subr.mxu1 %v571_v0  ;;  %v238_v24 = vld [vmem:[#allocation5 + $0x168] sm:$0xff]  ;;  %v237_v25 = vld [vmem:[#allocation5 + $0x160] sm:$0xff]  ;;  %v236_v26 = vld [vmem:[#allocation5 + $0x158] sm:$0xff] }
  0x2f   :  { %394 = vmatpush3.msra.mxu0 %v54_v7  ;;  %405 = vmatpush3.msra.mxu1 %v146_v9  ;;  %v235_v27 = vld [vmem:[#allocation5 + $0x150] sm:$0xff]  ;;  %v234_v28 = vld [vmem:[#allocation5 + $0x148] sm:$0xff]  ;;  %v233_v29 = vld [vmem:[#allocation5 + $0x140] sm:$0xff]  ;;  %p548_p5 = pnand %p547_p4, %p541_p1 }
  0x30   :  { %396 = vmatmul.mubr.msk.f32.vlgmr.msra.gmra.mxu0 %vm58_vm1, %v52_v8  ;;  %406 = vmatprep.subr.mxu1 %v571_v0  ;;  %v232_v30 = vld [vmem:[#allocation5 + $0x138] sm:$0xff]  ;;  %v231_v31 = vld [vmem:[#allocation5 + $0x130] sm:$0xff]  ;;  %v230_v32 = vld [vmem:[#allocation5 + $0x128] sm:$0xff] }
  0x31   :  { %433 = vmatprep.subr.mxu0 %v571_v0  ;;  %407 = vmatpush3.msra.mxu1 %v145_v10  ;;  %v229_v33 = vld [vmem:[#allocation5 + $0x120] sm:$0xff]  ;;  %v228_v34 = vld [vmem:[#allocation5 + $0x118] sm:$0xff]  ;;  %v227_v40 = vld [vmem:[#allocation5 + $0x110] sm:$0xff] }
  0x32   :  { %465 = vmatprep.mubr.msk.f32.mxu0 %vm572_vm0, %v571_v0  ;;  %408 = vmatprep.subr.mxu1 %v571_v0  ;;  %v53_v35 = vld [vmem:[#allocation7] sm:$0xff]  ;;  %v226_v41 = vld [vmem:[#allocation5 + $0x108] sm:$0xff] }
  0x33   :  { %409 = vmatpush3.msra.mxu1 %v144_v11  ;;  %434 = vmatpush3.msra.mxu0 %v240_v22  ;;  %v225_v42 = vld [vmem:[#allocation5 + $0x100] sm:$0xff]  ;;  %v151_v43 = vrot.slane %v53_v35, 1  ;;  %v241_v50 = vrot.slane %v53_v35, 2 }
  0x34   :  { %410 = vmatprep.subr.mxu1 %v571_v0  ;;  %435 = vmatprep.subr.mxu0 %v571_v0 }
  0x35   :  { %411 = vmatpush3.msra.mxu1 %v143_v12  ;;  %436 = vmatpush3.msra.mxu0 %v239_v23 }
  0x36   :  { %412 = vmatprep.subr.mxu1 %v571_v0  ;;  %437 = vmatprep.subr.mxu0 %v571_v0 }
  0x37   :  { %413 = vmatpush3.msra.mxu1 %v142_v13  ;;  %438 = vmatpush3.msra.mxu0 %v238_v24 }
  0x38   :  { %414 = vmatprep.subr.mxu1 %v571_v0  ;;  %439 = vmatprep.subr.mxu0 %v571_v0 }
  0x39   :  { %415 = vmatpush3.msra.mxu1 %v141_v14  ;;  %440 = vmatpush3.msra.mxu0 %v237_v25 }
  0x3a   :  { %416 = vmatprep.subr.mxu1 %v571_v0  ;;  %441 = vmatprep.subr.mxu0 %v571_v0 }
  0x3b   :  { %417 = vmatpush3.msra.mxu1 %v140_v15  ;;  %442 = vmatpush3.msra.mxu0 %v236_v26 }
  0x3c   :  { %418 = vmatprep.subr.mxu1 %v571_v0  ;;  %443 = vmatprep.subr.mxu0 %v571_v0 }
  0x3d   :  { %419 = vmatpush3.msra.mxu1 %v139_v16  ;;  %444 = vmatpush3.msra.mxu0 %v235_v27 }
  0x3e   :  { %420 = vmatprep.subr.mxu1 %v571_v0  ;;  %445 = vmatprep.subr.mxu0 %v571_v0 }
  0x3f   :  { %421 = vmatpush3.msra.mxu1 %v138_v17  ;;  %446 = vmatpush3.msra.mxu0 %v234_v28 }
  0x40   :  { %422 = vmatprep.subr.mxu1 %v571_v0  ;;  %447 = vmatprep.subr.mxu0 %v571_v0 }
  0x41   :  { %423 = vmatpush3.msra.mxu1 %v137_v18  ;;  %448 = vmatpush3.msra.mxu0 %v233_v29 }
  0x42   :  { %424 = vmatprep.subr.mxu1 %v571_v0  ;;  %449 = vmatprep.subr.mxu0 %v571_v0 }
  0x43   :  { %425 = vmatpush3.msra.mxu1 %v136_v19  ;;  %450 = vmatpush3.msra.mxu0 %v232_v30 }
  0x44   :  { %426 = vmatprep.subr.mxu1 %v571_v0  ;;  %451 = vmatprep.subr.mxu0 %v571_v0 }
  0x45   :  { %427 = vmatpush3.msra.mxu1 %v135_v20  ;;  %452 = vmatpush3.msra.mxu0 %v231_v31 }
  0x46   :  { %428 = vmatprep.subr.mxu1 %v571_v0  ;;  %453 = vmatprep.subr.mxu0 %v571_v0 }
  0x47   :  { %429 = vmatpush3.msra.mxu1 %v134_v21  ;;  %454 = vmatpush3.msra.mxu0 %v230_v32 }
  0x48   :  { %455 = vmatprep.subr.mxu0 %v571_v0 }
  0x49   :  { %456 = vmatpush3.msra.mxu0 %v229_v33 }
  0x4a   :  { %457 = vmatprep.subr.mxu0 %v571_v0 }
  0x4b   :  { %458 = vmatpush3.msra.mxu0 %v228_v34 }
  0x4c   :  { %459 = vmatprep.subr.mxu0 %v571_v0 }
  0x4d   :  { %460 = vmatpush3.msra.mxu0 %v227_v40 }
  0x4e   :  { %461 = vmatprep.subr.mxu0 %v571_v0 }
  0x4f   :  { %462 = vmatpush3.msra.mxu0 %v226_v41 }
  0x50   :  { %463 = vmatprep.subr.mxu0 %v571_v0 }
  0x51   :  { %464 = vmatpush3.msra.mxu0 %v225_v42 }
  0xf0   :  { %v128_v36 = vpop.f32.mrf.mxu0 }
  0xf1   :  { %v129_v37 = vadd.f32 %v128_v36, %v53_v35 }
  0xf2   :  { %v397_v38 = vpop.f32.mrf.mxu0 }
  0xf3   :  { %v132_v39 = vmax.f32 %v129_v37, 0.0 }
  0xf5   :  { %431 = vmatmul.mubr.f32.vlgmr.msra.gmra.mxu1 %v132_v39 }
 0x1b5   :  { %v219_v44 = vpop.f32.mrf.mxu1 }
 0x1b6   :  { %v220_v45 = vadd.f32 %v219_v44, %v151_v43 }
 0x1b7   :  { %v432_v46 = vpop.f32.mrf.mxu1 }
 0x1b8   :  { %v223_v47 = vmax.f32 %v220_v45, 0.0 }
 0x1ba   :  { %466 = vmatmul.mubr.f32.vlgmr.msra.gmra.mxu0 %v223_v47 }
 0x27a   :  { %v309_v51 = vpop.f32.mrf.mxu0 }
 0x27b   :  { %v310_v52 = vadd.f32 %v309_v51, %v241_v50 }
 0x27c   :  { %v467_v53 = vpop.f32.mrf.mxu0 }
 0x27d   :  { %v316_v54 = vsel %vm315_vm2, %v310_v52, -1e+30 }
 0x27e   :  { %v318_v55 = vsel %vm317_vm3, %v316_v54, -inf }
 0x27f   :  { %319 = vmax.xlane.f32.xlu0 %v318_v55 }
 0x308   :  { %v320_v56 = vpop.xlane.xlu0 %319 }
 0x309   :  { %v321_v57 = vsub.f32 %v316_v54, %v320_v56 }
 0x30b   :  { %v322_v58 = vmul.f32 1.442695, %v321_v57 }
 0x30d   :  { %476 = vpow2.f32 %v322_v58 }
 0x31a   :  { %v477_v59 = vpop.eup %476 }
 0x31b   :  { %v324_v60 = vsel %vm317_vm3, %v477_v59, 0.0 }
 0x31c   :  { %325 = vadd.xlane.f32.xlu0 %v324_v60 }
 0x3a5   :  { %v326_v61 = vpop.xlane.xlu0 %325 }
 0x3a6   :  { %478 = vrcp.f32 %v326_v61 }
 0x3b3   :  { %v479_v62 = vpop.eup %478 }
 0x3b4   :  { %v328_v63 = vmul.f32 %v479_v62, %v477_v59 }
 0x3b6   :  { %330 = vst.msk [vmem:[#allocation8] sm:$0x1] %vm329_vm4, %v328_v63 }
 0x3b7   :  { %551 = shalt.err (!%p548_p5)
}
 0x3b8   :  { %340 = dma.vmem_to_hbm [thread:$0]  %s338_s2, 16, %s651_s3, [#allocation4]  }
 0x3b9   :  { %564 = dma.done.wait [#allocation4], 16  }
 0x3ba   :  { %565 = vsyncadd [#allocation4], 4294967280 }
 0x3bb   :  { %344 = vsyncpa [#allocation3], 1 }
 0x3bc   :  { %345 = vsyncpa [#allocation6], 1 }
 0x3bd   :  { %346 = vsyncpa [#allocation4], 1 }

</bundles_post_ra>
